<compile_context>
chip_gen: v6e
topology: v6e:2x2x1
jax: 0.10.0
libtpu: 0.0.40
codegen_flags: <defaults>
</compile_context>

<pallas_src>
import functools
import math

import jax
import jax.numpy as jnp
from jax.experimental import pallas as pl
from jax.experimental.pallas import tpu as pltpu


def _round_up(x, m):
    return ((x + m - 1) // m) * m


# ---------------------------------------------------------------------------
# Kernel 1: tiled matmul with fused (scale, bias, activation) epilogue.
#   out = act((x @ w) * scale + bias)
# Implements every 1x1 convolution and the classifier Linear; Swish/Sigmoid is
# applied to the f32 accumulator right before the final store.
# ---------------------------------------------------------------------------
def _matmul_bn_act_kernel(x_ref, w_ref, s_ref, b_ref, o_ref, acc_ref, *, act):
    @pl.when(pl.program_id(2) == 0)
    def _():
        acc_ref[...] = jnp.zeros_like(acc_ref)

    acc_ref[...] += jnp.dot(x_ref[...], w_ref[...],
                            preferred_element_type=jnp.float32)

    @pl.when(pl.program_id(2) == pl.num_programs(2) - 1)
    def _():
        y = acc_ref[...] * s_ref[...] + b_ref[...]
        if act == "swish":
            y = y * jax.nn.sigmoid(y)
        elif act == "sigmoid":
            y = jax.nn.sigmoid(y)
        o_ref[...] = y.astype(o_ref.dtype)


def matmul_bn_act(x, w, scale, bias, act="none", tm=256, tn=256, tk=512):
    M, K = x.shape
    Kw, N = w.shape
    assert K == Kw
    tm = min(tm, _round_up(M, 8))       # multiple of 8 sublanes
    tn = min(tn, _round_up(N, 128))     # multiple of 128 lanes
    tk = min(tk, _round_up(K, 128))
    Mp, Kp, Np = _round_up(M, tm), _round_up(K, tk), _round_up(N, tn)

    xp = x if (Mp == M and Kp == K) else jnp.pad(x, ((0, Mp - M), (0, Kp - K)))
    wp = w if (Kp == K and Np == N) else jnp.pad(w, ((0, Kp - K), (0, Np - N)))
    s2 = jnp.pad(scale.astype(jnp.float32).reshape(1, N), ((0, 0), (0, Np - N)))
    b2 = jnp.pad(bias.astype(jnp.float32).reshape(1, N), ((0, 0), (0, Np - N)))

    grid = (Mp // tm, Np // tn, Kp // tk)
    out = pl.pallas_call(
        functools.partial(_matmul_bn_act_kernel, act=act),
        out_shape=jax.ShapeDtypeStruct((Mp, Np), x.dtype),
        grid_spec=pltpu.PrefetchScalarGridSpec(
            num_scalar_prefetch=0,
            grid=grid,
            in_specs=[
                pl.BlockSpec((tm, tk), lambda i, j, k: (i, k)),
                pl.BlockSpec((tk, tn), lambda i, j, k: (k, j)),
                pl.BlockSpec((1, tn), lambda i, j, k: (0, j)),
                pl.BlockSpec((1, tn), lambda i, j, k: (0, j)),
            ],
            out_specs=pl.BlockSpec((tm, tn), lambda i, j, k: (i, j)),
            scratch_shapes=[pltpu.VMEM((tm, tn), jnp.float32)],
        ),
        compiler_params=pltpu.CompilerParams(
            dimension_semantics=("parallel", "parallel", "arbitrary")),
        cost_estimate=pl.CostEstimate(
            flops=2 * Mp * Np * Kp,
            transcendentals=(Mp * Np if act in ("swish", "sigmoid") else 0),
            bytes_accessed=4 * (Mp * Kp + Kp * Np + Mp * Np + 2 * Np)),
    )(xp, wp, s2, b2)
    if Mp != M or Np != N:
        out = out[:M, :N]
    return out


# ---------------------------------------------------------------------------
# Kernel 2: fused per-channel BatchNorm (scale*x + bias) + activation.
# Follows the spatial (stem / depthwise) convs; Swish is fused so the
# activation tensor makes exactly one HBM read + one HBM write.
# ---------------------------------------------------------------------------
def _scale_bias_act_kernel(x_ref, s_ref, b_ref, o_ref, *, act):
    y = x_ref[...].astype(jnp.float32) * s_ref[...] + b_ref[...]
    if act == "swish":
        y = y * jax.nn.sigmoid(y)
    elif act == "sigmoid":
        y = jax.nn.sigmoid(y)
    o_ref[...] = y.astype(o_ref.dtype)


def scale_bias_act(x, scale, bias, act="none"):
    """x: (M, C) NHWC-flattened activations, scale/bias: (C,)."""
    M, C = x.shape
    # ~2 MiB f32 tiles -> input+output double-buffered stays well under the
    # scoped-VMEM default on v5e (16 MiB), v6e (32 MiB) and v7x (32 MiB).
    tm_cap = max(8, ((2 * 1024 * 1024) // (C * 4)) // 8 * 8)
    tm = min(_round_up(M, 8), tm_cap, 4096)
    Mp = _round_up(M, tm)
    # Give v7x's two TensorCores >=2 "parallel" grid steps when the whole
    # tensor would otherwise be a single block.
    if Mp // tm == 1 and tm >= 16 and (tm // 2) % 8 == 0:
        tm //= 2
    xp = x if Mp == M else jnp.pad(x, ((0, Mp - M), (0, 0)))
    s2 = scale.astype(jnp.float32).reshape(1, C)
    b2 = bias.astype(jnp.float32).reshape(1, C)
    out = pl.pallas_call(
        functools.partial(_scale_bias_act_kernel, act=act),
        out_shape=jax.ShapeDtypeStruct((Mp, C), x.dtype),
        grid_spec=pltpu.PrefetchScalarGridSpec(
            num_scalar_prefetch=0,
            grid=(Mp // tm,),
            in_specs=[
                pl.BlockSpec((tm, C), lambda i: (i, 0)),
                pl.BlockSpec((1, C), lambda i: (0, 0)),
                pl.BlockSpec((1, C), lambda i: (0, 0)),
            ],
            out_specs=pl.BlockSpec((tm, C), lambda i: (i, 0)),
        ),
        compiler_params=pltpu.CompilerParams(
            dimension_semantics=("parallel",)),
        input_output_aliases={0: 0},
        cost_estimate=pl.CostEstimate(
            flops=4 * Mp * C,
            transcendentals=(Mp * C if act in ("swish", "sigmoid") else 0),
            bytes_accessed=2 * Mp * C * 4 + 2 * C * 4),
    )(xp, s2, b2)
    return out if Mp == M else out[:M]


# ---------------------------------------------------------------------------
# Spatial convs (PaddedConv2d semantics: symmetric ceil-SAME padding).
# ---------------------------------------------------------------------------
def _same_pad(size, stride, kernel, dilation=1):
    out = math.ceil(size / stride)
    total = max((out - 1) * stride - size + dilation * (kernel - 1) + 1, 0)
    return math.ceil(total / 2)


def padded_conv2d(x_nhwc, w_hwio, stride, groups=1):
    # TODO(synk): no clean Pallas equivalent for these small spatial convs.
    kh, kw = w_hwio.shape[0], w_hwio.shape[1]
    H, W = x_nhwc.shape[1], x_nhwc.shape[2]
    ph = _same_pad(H, stride, kh)
    pw = _same_pad(W, stride, kw)
    return jax.lax.conv_general_dilated(
        x_nhwc, w_hwio,
        window_strides=(stride, stride),
        padding=((ph, ph), (pw, pw)),
        dimension_numbers=("NHWC", "HWIO", "NHWC"),
        feature_group_count=groups)


# ---------------------------------------------------------------------------
# EfficientNetB0 configuration, parameters and forward pass.
# ---------------------------------------------------------------------------
STAGES = [
    # (n_repeats, in_ch, out_ch, kernel, stride, expand_ratio)
    (1, 32, 16, 3, 1, 1),
    (2, 16, 24, 3, 2, 6),
    (2, 24, 40, 5, 2, 6),
    (3, 40, 80, 3, 2, 6),
    (3, 80, 112, 5, 1, 6),
    (4, 112, 192, 5, 2, 6),
    (1, 192, 320, 3, 1, 6),
]
SE_RATIO = 0.25
BN_EPS = 1e-3


class _KeyGen:
    def __init__(self, key):
        self._key = key

    def __call__(self):
        self._key, sub = jax.random.split(self._key)
        return sub


def _bn_fold(kg, c):
    gamma = jax.random.uniform(kg(), (c,), jnp.float32, 0.5, 1.5)
    beta = 0.1 * jax.random.normal(kg(), (c,), jnp.float32)
    mean = 0.1 * jax.random.normal(kg(), (c,), jnp.float32)
    var = jax.random.uniform(kg(), (c,), jnp.float32, 0.5, 1.5)
    s = gamma / jnp.sqrt(var + BN_EPS)
    return s, beta - mean * s


def _dense_w(kg, cin, cout):
    return jax.random.normal(kg(), (cin, cout), jnp.float32) / math.sqrt(cin)


def make_params(kg, n_classes):
    params = {}
    params["stem_w"] = jax.random.normal(kg(), (3, 3, 3, 32), jnp.float32) / math.sqrt(27.0)
    params["stem_s"], params["stem_b"] = _bn_fold(kg, 32)

    blocks = []
    for (reps, cin, cout, k, stride, expand) in STAGES:
        for r in range(reps):
            bcin = cin if r == 0 else cout
            bstride = stride if r == 0 else 1
            cexp = int(bcin * expand)
            cse = max(1, int(bcin * SE_RATIO))
            bp = {"k": k, "stride": bstride, "expand": expand}
            if expand != 1:
                bp["expand_w"] = _dense_w(kg, bcin, cexp)
                bp["expand_s"], bp["expand_b"] = _bn_fold(kg, cexp)
            bp["dw_w"] = jax.random.normal(kg(), (k, k, 1, cexp), jnp.float32) / math.sqrt(k * k)
            bp["dw_s"], bp["dw_b"] = _bn_fold(kg, cexp)
            bp["se1_w"] = _dense_w(kg, cexp, cse)
            bp["se1_b"] = 0.1 * jax.random.normal(kg(), (cse,), jnp.float32)
            bp["se2_w"] = _dense_w(kg, cse, cexp)
            bp["se2_b"] = 0.1 * jax.random.normal(kg(), (cexp,), jnp.float32)
            bp["proj_w"] = _dense_w(kg, cexp, cout)
            bp["proj_s"], bp["proj_b"] = _bn_fold(kg, cout)
            blocks.append(bp)
    params["blocks"] = blocks

    params["head_w"] = _dense_w(kg, 320, 1280)
    params["head_s"], params["head_b"] = _bn_fold(kg, 1280)
    params["fc_w"] = _dense_w(kg, 1280, n_classes)
    params["fc_b"] = jnp.zeros((n_classes,), jnp.float32)
    return params


def _mbconv(x, bp):
    inp = x
    B, H, W, C = x.shape
    if bp["expand"] != 1:
        # 1x1 expand conv + BN + Swish, fused in the matmul epilogue.
        x = matmul_bn_act(x.reshape(-1, C), bp["expand_w"], bp["expand_s"],
                          bp["expand_b"], act="swish").reshape(B, H, W, -1)
    cexp = x.shape[-1]
    # Depthwise conv, then fused BN + Swish Pallas kernel.
    x = padded_conv2d(x, bp["dw_w"], bp["stride"], groups=cexp)
    Bo, Ho, Wo, _ = x.shape
    x = scale_bias_act(x.reshape(-1, cexp), bp["dw_s"], bp["dw_b"],
                       act="swish").reshape(Bo, Ho, Wo, cexp)
    # Squeeze-and-excitation: avg pool + two fused 1x1 convs (swish / sigmoid).
    se = jnp.mean(x, axis=(1, 2))
    se = matmul_bn_act(se, bp["se1_w"], jnp.ones_like(bp["se1_b"]),
                       bp["se1_b"], act="swish")
    se = matmul_bn_act(se, bp["se2_w"], jnp.ones_like(bp["se2_b"]),
                       bp["se2_b"], act="sigmoid")
    x = x * se[:, None, None, :]
    # 1x1 projection conv + BN (no activation).
    out = matmul_bn_act(x.reshape(-1, cexp), bp["proj_w"], bp["proj_s"],
                        bp["proj_b"], act="none").reshape(Bo, Ho, Wo, -1)
    if out.shape == inp.shape:
        out = out + inp   # DropConnect is identity at inference
    return out


def efficientnet_b0(params, x_nchw):
    x = jnp.transpose(x_nchw, (0, 2, 3, 1))          # NCHW -> NHWC
    # Stem: 3x3 s2 conv, then fused BN + Swish.
    x = padded_conv2d(x, params["stem_w"], stride=2)
    B, H, W, C = x.shape
    x = scale_bias_act(x.reshape(-1, C), params["stem_s"], params["stem_b"],
                       act="swish").reshape(B, H, W, C)
    for bp in params["blocks"]:
        x = _mbconv(x, bp)
    # Head: 1x1 conv + BN + Swish (fused), global avg pool, (dropout=identity),
    # Linear.
    B, H, W, C = x.shape
    x = matmul_bn_act(x.reshape(-1, C), params["head_w"], params["head_s"],
                      params["head_b"], act="swish").reshape(B, H, W, -1)
    x = jnp.mean(x, axis=(1, 2))                      # AdaptiveAvgPool + Squeeze
    return matmul_bn_act(x, params["fc_w"], jnp.ones_like(params["fc_b"]),
                         params["fc_b"], act="none")


if __name__ == "__main__":
    n_classes = 10
    root = jax.random.PRNGKey(0)
    x_key, p_key = jax.random.split(root)
    x = jax.random.normal(x_key, (2, 3, 32, 32), jnp.float32)   # NCHW input
    params = make_params(_KeyGen(p_key), n_classes)

    # --- unit checks of the Pallas kernels against plain-JAX references ----
    ck = _KeyGen(jax.random.PRNGKey(42))
    xa = jax.random.normal(ck(), (37, 70), jnp.float32)
    wa = jax.random.normal(ck(), (70, 130), jnp.float32)
    sa = jax.random.uniform(ck(), (130,), jnp.float32, 0.5, 1.5)
    ba = 0.1 * jax.random.normal(ck(), (130,), jnp.float32)
    got = matmul_bn_act(xa, wa, sa, ba, act="swish")
    ref = (xa @ wa) * sa + ba
    ref = ref * jax.nn.sigmoid(ref)
    assert jnp.allclose(got, ref, atol=5e-3, rtol=5e-3), "matmul+swish mismatch"

    xb = jax.random.normal(ck(), (200, 96), jnp.float32)
    sb = jax.random.uniform(ck(), (96,), jnp.float32, 0.5, 1.5)
    bb = 0.1 * jax.random.normal(ck(), (96,), jnp.float32)
    got2 = scale_bias_act(xb, sb, bb, act="swish")
    ref2 = xb * sb + bb
    ref2 = ref2 * jax.nn.sigmoid(ref2)
    assert jnp.allclose(got2, ref2, atol=1e-5, rtol=1e-5), "bn+swish mismatch"

    # --- full EfficientNetB0 forward ---------------------------------------
    fwd = jax.jit(lambda inp: efficientnet_b0(params, inp))
    logits = jax.block_until_ready(fwd(x))
    assert logits.shape == (2, n_classes), logits.shape
    assert bool(jnp.all(jnp.isfinite(logits)))
    print("KERNEL_OK")
</pallas_src>

<mosaic_0001>
module attributes {stable_mosaic.version = 11 : i64} {
  func.func @_matmul_bn_act_kernel(%arg0: i32, %arg1: i32, %arg2: i32, %arg3: memref<40x128xf32, #tpu.memory_space<vmem>>, %arg4: memref<128x256xf32, #tpu.memory_space<vmem>>, %arg5: memref<1x256xf32, #tpu.memory_space<vmem>>, %arg6: memref<1x256xf32, #tpu.memory_space<vmem>>, %arg7: memref<40x256xf32, #tpu.memory_space<vmem>>, %arg8: memref<40x256xf32, #tpu.memory_space<vmem>>) attributes {dimension_semantics = [#tpu.dimension_semantics<parallel>, #tpu.dimension_semantics<parallel>, #tpu.dimension_semantics<arbitrary>], iteration_bounds = array<i64: 1, 1, 1>, scalar_prefetch = 0 : i64, scratch_operands = 1 : i64, tpu.core_type = #tpu.core_type<tc>, window_params = [{transform_indices = @transform_0, window_bounds = array<i64: 40, 128>}, {transform_indices = @transform_1, window_bounds = array<i64: 128, 256>}, {transform_indices = @transform_2, window_bounds = array<i64: 1, 256>}, {transform_indices = @transform_3, window_bounds = array<i64: 1, 256>}, {transform_indices = @transform_4, window_bounds = array<i64: 40, 256>}]} {
    %c0_i32 = arith.constant 0 : i32
    %0 = arith.cmpi eq, %arg2, %c0_i32 : i32
    %1 = arith.extui %0 : i1 to i32
    %c0_i32_0 = arith.constant 0 : i32
    %2 = arith.cmpi ne, %1, %c0_i32_0 : i32
    scf.if %2 {
      %cst_10 = arith.constant 0.000000e+00 : f32
      %12 = vector.broadcast %cst_10 : f32 to vector<40x256xf32>
      %c0_11 = arith.constant 0 : index
      %c0_12 = arith.constant 0 : index
      %13 = vector.load %arg8[%c0_11, %c0_12] : memref<40x256xf32, #tpu.memory_space<vmem>>, vector<40x256xf32>
      tpu.vector_store %arg8[%c0_11, %c0_12], %12 {strides = array<i32>} : memref<40x256xf32, #tpu.memory_space<vmem>>, vector<40x256xf32>,
    } else {
    }
    %c0 = arith.constant 0 : index
    %c0_1 = arith.constant 0 : index
    %3 = vector.load %arg8[%c0, %c0_1] : memref<40x256xf32, #tpu.memory_space<vmem>>, vector<40x256xf32>
    %c0_2 = arith.constant 0 : index
    %c0_3 = arith.constant 0 : index
    %4 = vector.load %arg3[%c0_2, %c0_3] : memref<40x128xf32, #tpu.memory_space<vmem>>, vector<40x128xf32>
    %c0_4 = arith.constant 0 : index
    %c0_5 = arith.constant 0 : index
    %5 = vector.load %arg4[%c0_4, %c0_5] : memref<128x256xf32, #tpu.memory_space<vmem>>, vector<128x256xf32>
    %cst = arith.constant dense<0.000000e+00> : vector<40x256xf32>
    %6 = tpu.matmul %4, %5, %cst {dimension_numbers = #tpu.dot_dimension_numbers<[1], [0], [0], [1], [0, 0, 1, 1], [], []>} : vector<40x128xf32>, vector<128x256xf32>, vector<40x256xf32> -> vector<40x256xf32>
    %7 = arith.addf %3, %6 : vector<40x256xf32>
    %c0_6 = arith.constant 0 : index
    %c0_7 = arith.constant 0 : index
    %8 = vector.load %arg8[%c0_6, %c0_7] : memref<40x256xf32, #tpu.memory_space<vmem>>, vector<40x256xf32>
    tpu.vector_store %arg8[%c0_6, %c0_7], %7 {strides = array<i32>} : memref<40x256xf32, #tpu.memory_space<vmem>>, vector<40x256xf32>,
    %c0_i32_8 = arith.constant 0 : i32
    %9 = arith.cmpi eq, %arg2, %c0_i32_8 : i32
    %10 = arith.extui %9 : i1 to i32
    %c0_i32_9 = arith.constant 0 : i32
    %11 = arith.cmpi ne, %10, %c0_i32_9 : i32
    scf.if %11 {
      %c0_10 = arith.constant 0 : index
      %c0_11 = arith.constant 0 : index
      %12 = vector.load %arg8[%c0_10, %c0_11] : memref<40x256xf32, #tpu.memory_space<vmem>>, vector<40x256xf32>
      %c0_12 = arith.constant 0 : index
      %c0_13 = arith.constant 0 : index
      %13 = vector.load %arg5[%c0_12, %c0_13] : memref<1x256xf32, #tpu.memory_space<vmem>>, vector<1x256xf32>
      %14 = vector.broadcast %13 : vector<1x256xf32> to vector<40x256xf32>
      %15 = arith.mulf %12, %14 : vector<40x256xf32>
      %c0_14 = arith.constant 0 : index
      %c0_15 = arith.constant 0 : index
      %16 = vector.load %arg6[%c0_14, %c0_15] : memref<1x256xf32, #tpu.memory_space<vmem>>, vector<1x256xf32>
      %17 = vector.broadcast %16 : vector<1x256xf32> to vector<40x256xf32>
      %18 = arith.addf %15, %17 : vector<40x256xf32>
      %19 = arith.negf %18 : vector<40x256xf32>
      %20 = math.exp %19 : vector<40x256xf32>
      %cst_16 = arith.constant 1.000000e+00 : f32
      %21 = vector.broadcast %cst_16 : f32 to vector<40x256xf32>
      %22 = arith.addf %21, %20 : vector<40x256xf32>
      %23 = arith.divf %21, %22 : vector<40x256xf32>
      %24 = arith.mulf %18, %23 : vector<40x256xf32>
      %c0_17 = arith.constant 0 : index
      %c0_18 = arith.constant 0 : index
      %25 = vector.load %arg7[%c0_17, %c0_18] : memref<40x256xf32, #tpu.memory_space<vmem>>, vector<40x256xf32>
      tpu.vector_store %arg7[%c0_17, %c0_18], %24 {strides = array<i32>} : memref<40x256xf32, #tpu.memory_space<vmem>>, vector<40x256xf32>,
    } else {
    }
    return
  }
  func.func @transform_0(%arg0: i32, %arg1: i32, %arg2: i32) -> (i32, i32) {
    %c0_i32 = arith.constant 0 : i32
    return %arg0, %arg2 : i32, i32
  }
  func.func @transform_1(%arg0: i32, %arg1: i32, %arg2: i32) -> (i32, i32) {
    %c0_i32 = arith.constant 0 : i32
    return %arg2, %arg1 : i32, i32
  }
  func.func @transform_2(%arg0: i32, %arg1: i32, %arg2: i32) -> (i32, i32) {
    %c0_i32 = arith.constant 0 : i32
    %c0_i32_0 = arith.constant 0 : i32
    return %c0_i32, %arg1 : i32, i32
  }
  func.func @transform_3(%arg0: i32, %arg1: i32, %arg2: i32) -> (i32, i32) {
    %c0_i32 = arith.constant 0 : i32
    %c0_i32_0 = arith.constant 0 : i32
    return %c0_i32, %arg1 : i32, i32
  }
  func.func @transform_4(%arg0: i32, %arg1: i32, %arg2: i32) -> (i32, i32) {
    %c0_i32 = arith.constant 0 : i32
    return %arg0, %arg1 : i32, i32
  }
}

</mosaic_0001>

<bundles_post_ra>
// kernel: tpu_custom_call.1
= control target key start
LH: loop header
LB: loop body
LE: loop exit
PB: predicated region body
PF: predicated region fallthrough
CT: control target
= control target key end

     0   :  { %9 = vsyncpa [#allocation4], 0  ;;  %s632_s0 = inlined_call_operand.hbm [shape: f32[40,128], index: 0, kind: input, shape index: {}]   ;;  %s633_s1 = inlined_call_operand.hbm [shape: f32[128,256], index: 1, kind: input, shape index: {}]   ;;  %s634_s2 = inlined_call_operand.vmem [shape: f32[1,256], index: 2, kind: input, shape index: {}]   ;;  %s635_s3 = inlined_call_operand.vmem [shape: f32[1,256], index: 3, kind: input, shape index: {}]   ;;  %s636_s4 = inlined_call_operand.hbm [shape: f32[40,256], index: 4, kind: output, shape index: {}]  }
   0x1   :  { %10 = vsyncpa [#allocation7], 0 }
   0x2   :  { %11 = vsyncpa [#allocation5], 0  ;;  %s533_s15 = smov [#allocation3]  }
   0x3   :  { %s17_s16 = sshll.u32 %s533_s15, 4  ;;  %s18_s16 = int_to_ptr.vmem [resolvable:$true] %s17_s16 }
   0x4   :  { %s475_s17 = scalar_lea.vmem %s18_s16, 640  ;;  %p480_p1 = scmp.lt.s32.totalorder %s18_s16, %s18_s16 }
   0x5   :  { %p476_p0 = scmp.ne.s32.totalorder %s18_s16, %s475_s17  ;;  %p481_p2 = scmp.lt.s32.totalorder %s475_s17, %s475_s17 }
   0x7   :  { %p482_p3 = por %p481_p2, %p480_p1 }
   0x9   :  { %p483_p4 = pnand %p482_p3, %p476_p0 }
   0xb   :  { %486 = shalt.err (!%p483_p4)
}
   0xc   :  { %s534_s18 = smov 128   ;;  %s535_s19 = smov 8  }
   0xd   :  { %23 = dma.hbm_to_vmem [thread:$0]  %s632_s0, 640, %s18_s16, [#allocation4], %s534_s18, %s534_s18, %s535_s19  }
   0xe   :  { %s536_s22 = smov [#allocation6]  }
   0xf   :  { %s29_s23 = sshll.u32 %s536_s22, 4  ;;  %s30_s23 = int_to_ptr.vmem [resolvable:$true] %s29_s23 }
  0x10   :  { %s495_s24 = scalar_lea.vmem %s30_s23, 4096  ;;  %p500_p6 = scmp.lt.s32.totalorder %s30_s23, %s30_s23 }
  0x11   :  { %p496_p5 = scmp.ne.s32.totalorder %s30_s23, %s495_s24  ;;  %p501_p7 = scmp.lt.s32.totalorder %s495_s24, %s495_s24 }
  0x13   :  { %p502_p8 = por %p501_p7, %p500_p6 }
  0x15   :  { %p503_p9 = pnand %p502_p8, %p496_p5 }
  0x17   :  { %506 = shalt.err (!%p503_p9)
}
  0x18   :  { %s537_s25 = smov 256   ;;  %s538_s26 = smov 16  }
  0x19   :  { %35 = dma.hbm_to_vmem [thread:$0]  %s633_s1, 4096, %s30_s23, [#allocation7], %s537_s25, %s537_s25, %s538_s26  }
  0x1a   :  { %527 = dma.done.wait [#allocation4], 640  }
  0x1b   :  { %528 = vsyncadd [#allocation4], 4294966656 }
  0x1c   :  { %529 = dma.done.wait [#allocation7], 4096  }
  0x1d   :  { %530 = vsyncadd [#allocation7], 4294963200  ;;  %v539_v0 = vmov 0.0   ;;  %v106_v1 = vld [vmem:[#allocation6 + $0xf8] sm:$0xff]  ;;  %v105_v2 = vld [vmem:[#allocation6 + $0xf0] sm:$0xff]  ;;  %v237_v38 = vlaneseq }
  0x1e   :  { %171 = vmatprep.mubr.f32.mxu0 %v539_v0  ;;  %189 = vmatprep.mubr.f32.mxu1 %v539_v0  ;;  %v104_v3 = vld [vmem:[#allocation6 + $0xe8] sm:$0xff]  ;;  %v103_v4 = vld [vmem:[#allocation6 + $0xe0] sm:$0xff]  ;;  %v102_v5 = vld [vmem:[#allocation6 + $0xd8] sm:$0xff] }
  0x1f   :  { %107 = vmatprep.subr.mxu0 %v106_v1  ;;  %387 = vmatprep.subr.mxu1 %v106_v1  ;;  %v101_v6 = vld [vmem:[#allocation6 + $0xd0] sm:$0xff]  ;;  %v100_v7 = vld [vmem:[#allocation6 + $0xc8] sm:$0xff]  ;;  %v99_v8 = vld [vmem:[#allocation6 + $0xc0] sm:$0xff]  ;;  %v238_v39 = vshrl.u32 %v237_v38, 7 }
  0x20   :  { %108 = vmatpush1.msra.mxu0 %v105_v2  ;;  %403 = vmatpush1.msra.mxu1 %v105_v2  ;;  %v98_v9 = vld [vmem:[#allocation6 + $0xb8] sm:$0xff]  ;;  %v97_v10 = vld [vmem:[#allocation6 + $0xb0] sm:$0xff]  ;;  %v96_v11 = vld [vmem:[#allocation6 + $0xa8] sm:$0xff] }
  0x21   :  { %109 = vmatprep.subr.mxu0 %v104_v3  ;;  %388 = vmatprep.subr.mxu1 %v104_v3  ;;  %v95_v12 = vld [vmem:[#allocation6 + $0xa0] sm:$0xff]  ;;  %v94_v13 = vld [vmem:[#allocation6 + $0x98] sm:$0xff]  ;;  %v93_v14 = vld [vmem:[#allocation6 + $0x90] sm:$0xff]  ;;  %v239_v40 = vsub.s32 0, %v238_v39  ;;  %v243_v42 = vsub.s32 1, %v238_v39 }
  0x22   :  { %110 = vmatpush1.msra.mxu0 %v103_v4  ;;  %404 = vmatpush1.msra.mxu1 %v103_v4  ;;  %v92_v15 = vld [vmem:[#allocation6 + $0x88] sm:$0xff]  ;;  %v91_v16 = vld [vmem:[#allocation6 + $0x80] sm:$0xff]  ;;  %v90_v17 = vld [vmem:[#allocation6 + $0x78] sm:$0xff] }
  0x23   :  { %111 = vmatprep.subr.mxu0 %v102_v5  ;;  %389 = vmatprep.subr.mxu1 %v102_v5  ;;  %v89_v18 = vld [vmem:[#allocation6 + $0x70] sm:$0xff]  ;;  %v88_v19 = vld [vmem:[#allocation6 + $0x68] sm:$0xff]  ;;  %v87_v20 = vld [vmem:[#allocation6 + $0x60] sm:$0xff] }
  0x24   :  { %112 = vmatpush1.msra.mxu0 %v101_v6  ;;  %405 = vmatpush1.msra.mxu1 %v101_v6  ;;  %v86_v21 = vld [vmem:[#allocation6 + $0x58] sm:$0xff]  ;;  %v85_v22 = vld [vmem:[#allocation6 + $0x50] sm:$0xff]  ;;  %v84_v23 = vld [vmem:[#allocation6 + $0x48] sm:$0xff] }
  0x25   :  { %113 = vmatprep.subr.mxu0 %v100_v7  ;;  %390 = vmatprep.subr.mxu1 %v100_v7  ;;  %v83_v24 = vld [vmem:[#allocation6 + $0x40] sm:$0xff]  ;;  %v82_v25 = vld [vmem:[#allocation6 + $0x38] sm:$0xff]  ;;  %v81_v26 = vld [vmem:[#allocation6 + $0x30] sm:$0xff] }
  0x26   :  { %114 = vmatpush1.msra.mxu0 %v99_v8  ;;  %406 = vmatpush1.msra.mxu1 %v99_v8  ;;  %v80_v27 = vld [vmem:[#allocation6 + $0x28] sm:$0xff]  ;;  %v79_v28 = vld [vmem:[#allocation6 + $0x20] sm:$0xff]  ;;  %v78_v29 = vld [vmem:[#allocation6 + $0x18] sm:$0xff] }
  0x27   :  { %115 = vmatprep.subr.mxu0 %v98_v9  ;;  %391 = vmatprep.subr.mxu1 %v98_v9  ;;  %v77_v30 = vld [vmem:[#allocation6 + $0x10] sm:$0xff]  ;;  %v76_v31 = vld [vmem:[#allocation6 + $0x8] sm:$0xff]  ;;  %v75_v32 = vld [vmem:[#allocation6] sm:$0xff] }
  0x28   :  { %116 = vmatpush1.msra.mxu0 %v97_v10  ;;  %407 = vmatpush1.msra.mxu1 %v97_v10  ;;  %v70_v33 = vld [vmem:[#allocation3] sm:$0xff]  ;;  %v73_v34 = vld [vmem:[#allocation3 + $0x18] sm:$0xff]  ;;  %v71_v35 = vld [vmem:[#allocation3 + $0x8] sm:$0xff] }
  0x29   :  { %117 = vmatprep.subr.mxu0 %v96_v11  ;;  %392 = vmatprep.subr.mxu1 %v96_v11  ;;  %v74_v36 = vld [vmem:[#allocation3 + $0x20] sm:$0xff]  ;;  %v72_v37 = vld [vmem:[#allocation3 + $0x10] sm:$0xff] }
  0x2a   :  { %118 = vmatpush1.msra.mxu0 %v95_v12  ;;  %408 = vmatpush1.msra.mxu1 %v95_v12  ;;  %v235_v41 = vld [vmem:[%s634_s2] sm:$0x3]  ;;  %s540_s2 = smov [#allocation8]  }
  0x2b   :  { %119 = vmatprep.subr.mxu0 %v94_v13  ;;  %393 = vmatprep.subr.mxu1 %v94_v13  ;;  %v257_v43 = vld [vmem:[%s635_s3] sm:$0x3]  ;;  %v240_v44 = vrot.slane %v235_v41, %v239_v40  ;;  %v244_v46 = vrot.slane %v235_v41, %v243_v42  ;;  %s364_s3 = sshll.u32 %s540_s2, 4  ;;  %s365_s3 = int_to_ptr.vmem [resolvable:$true] %s364_s3 }
  0x2c   :  { %120 = vmatpush1.msra.mxu0 %v93_v14  ;;  %409 = vmatpush1.msra.mxu1 %v93_v14  ;;  %v262_v45 = vrot.slane %v257_v43, %v239_v40  ;;  %v266_v51 = vrot.slane %v257_v43, %v243_v42  ;;  %s507_s5 = scalar_lea.vmem %s365_s3, 1280  ;;  %p512_p11 = scmp.lt.s32.totalorder %s365_s3, %s365_s3 }
  0x2d   :  { %121 = vmatprep.subr.mxu0 %v92_v15  ;;  %394 = vmatprep.subr.mxu1 %v92_v15  ;;  %p508_p10 = scmp.ne.s32.totalorder %s365_s3, %s507_s5  ;;  %p513_p12 = scmp.lt.s32.totalorder %s507_s5, %s507_s5 }
  0x2e   :  { %122 = vmatpush1.msra.mxu0 %v91_v16  ;;  %410 = vmatpush1.msra.mxu1 %v91_v16 }
  0x2f   :  { %123 = vmatprep.subr.mxu0 %v90_v17  ;;  %395 = vmatprep.subr.mxu1 %v90_v17  ;;  %p514_p13 = por %p513_p12, %p512_p11 }
  0x30   :  { %124 = vmatpush1.msra.mxu0 %v89_v18  ;;  %411 = vmatpush1.msra.mxu1 %v89_v18 }
  0x31   :  { %125 = vmatprep.subr.mxu0 %v88_v19  ;;  %396 = vmatprep.subr.mxu1 %v88_v19  ;;  %p515_p0 = pnand %p514_p13, %p508_p10 }
  0x32   :  { %126 = vmatpush1.msra.mxu0 %v87_v20  ;;  %412 = vmatpush1.msra.mxu1 %v87_v20 }
  0x33   :  { %127 = vmatprep.subr.mxu0 %v86_v21  ;;  %397 = vmatprep.subr.mxu1 %v86_v21 }
  0x34   :  { %128 = vmatpush1.msra.mxu0 %v85_v22  ;;  %413 = vmatpush1.msra.mxu1 %v85_v22 }
  0x35   :  { %129 = vmatprep.subr.mxu0 %v84_v23  ;;  %398 = vmatprep.subr.mxu1 %v84_v23 }
  0x36   :  { %130 = vmatpush1.msra.mxu0 %v83_v24  ;;  %414 = vmatpush1.msra.mxu1 %v83_v24 }
  0x37   :  { %131 = vmatprep.subr.mxu0 %v82_v25  ;;  %399 = vmatprep.subr.mxu1 %v82_v25 }
  0x38   :  { %132 = vmatpush1.msra.mxu0 %v81_v26  ;;  %415 = vmatpush1.msra.mxu1 %v81_v26 }
  0x39   :  { %133 = vmatprep.subr.mxu0 %v80_v27  ;;  %400 = vmatprep.subr.mxu1 %v80_v27 }
  0x3a   :  { %134 = vmatpush1.msra.mxu0 %v79_v28  ;;  %416 = vmatpush1.msra.mxu1 %v79_v28 }
  0x3b   :  { %135 = vmatprep.subr.mxu0 %v78_v29  ;;  %401 = vmatprep.subr.mxu1 %v78_v29 }
  0x3c   :  { %136 = vmatpush1.msra.mxu0 %v77_v30  ;;  %417 = vmatpush1.msra.mxu1 %v77_v30 }
  0x3d   :  { %137 = vmatprep.subr.mxu0 %v76_v31  ;;  %402 = vmatprep.subr.mxu1 %v76_v31 }
  0x3e   :  { %138 = vmatpush1.msra.mxu0 %v75_v32  ;;  %418 = vmatpush1.msra.mxu1 %v75_v32 }
  0x3f   :  { %172 = vmatmul.mubr.f32.vlgmr.msra.gmra.mxu0 %v70_v33  ;;  %190 = vmatmul.mubr.f32.vlgmr.msra.gmra.mxu1 %v73_v34 }
  0x40   :  { %177 = vmatprep.mubr.f32.mxu0 %v539_v0  ;;  %195 = vmatprep.mubr.f32.mxu1 %v539_v0 }
  0x43   :  { %178 = vmatmul.mubr.f32.gmra.mxu0 %v71_v35  ;;  %196 = vmatmul.mubr.f32.gmra.mxu1 %v74_v36 }
  0x44   :  { %183 = vmatprep.mubr.f32.mxu0 %v539_v0 }
  0x47   :  { %184 = vmatmul.mubr.f32.gmra.mxu0 %v72_v37 }
  0xff   :  { %v173_v47 = vpop.f32.mrf.mxu0  ;;  %v191_v48 = vpop.f32.mrf.mxu1 }
 0x100   :  { %v247_v49 = vmul.f32 %v240_v44, %v173_v47  ;;  %v253_v50 = vmul.f32 %v240_v44, %v191_v48 }
 0x101   :  { %v175_v52 = vpop.f32.mrf.mxu0  ;;  %v193_v53 = vpop.f32.mrf.mxu1 }
 0x102   :  { %v586_v54 = vadd.f32 %v262_v45, %v247_v49  ;;  %v588_v55 = vadd.f32 %v262_v45, %v253_v50  ;;  %v248_v56 = vmul.f32 %v244_v46, %v175_v52  ;;  %v254_v57 = vmul.f32 %v244_v46, %v193_v53 }
 0x103   :  { %v179_v58 = vpop.f32.mrf.mxu0  ;;  %v197_v59 = vpop.f32.mrf.mxu1 }
 0x104   :  { %v377_v60 = vmul.f32 -1.442695, %v586_v54  ;;  %v383_v61 = vmul.f32 -1.442695, %v588_v55  ;;  %v592_v62 = vadd.f32 %v266_v51, %v248_v56  ;;  %v594_v63 = vadd.f32 %v266_v51, %v254_v57 }
 0x105   :  { %v249_v0 = vmul.f32 %v240_v44, %v179_v58  ;;  %v255_v1 = vmul.f32 %v240_v44, %v197_v59  ;;  %v181_v2 = vpop.f32.mrf.mxu0  ;;  %v199_v3 = vpop.f32.mrf.mxu1 }
 0x106   :  { %427 = vpow2.f32 %v377_v60  ;;  %v378_v4 = vmul.f32 -1.442695, %v592_v62  ;;  %v384_v5 = vmul.f32 -1.442695, %v594_v63  ;;  %v250_v6 = vmul.f32 %v244_v46, %v181_v2 }
 0x107   :  { %429 = vpow2.f32 %v383_v61  ;;  %v598_v7 = vadd.f32 %v262_v45, %v249_v0  ;;  %v600_v8 = vadd.f32 %v262_v45, %v255_v1  ;;  %v256_v9 = vmul.f32 %v244_v46, %v199_v3  ;;  %v185_v10 = vpop.f32.mrf.mxu0 }
 0x108   :  { %431 = vpow2.f32 %v378_v4  ;;  %v602_v11 = vadd.f32 %v266_v51, %v250_v6  ;;  %v251_v12 = vmul.f32 %v240_v44, %v185_v10 }
 0x109   :  { %433 = vpow2.f32 %v384_v5  ;;  %v379_v13 = vmul.f32 -1.442695, %v598_v7  ;;  %v385_v14 = vmul.f32 -1.442695, %v600_v8  ;;  %v606_v15 = vadd.f32 %v266_v51, %v256_v9  ;;  %v187_v16 = vpop.f32.mrf.mxu0 }
 0x10a   :  { %v380_v17 = vmul.f32 -1.442695, %v602_v11  ;;  %v609_v18 = vadd.f32 %v262_v45, %v251_v12  ;;  %v252_v19 = vmul.f32 %v244_v46, %v187_v16 }
 0x10b   :  { %435 = vpow2.f32 %v379_v13  ;;  %v386_v20 = vmul.f32 -1.442695, %v606_v15 }
 0x10c   :  { %437 = vpow2.f32 %v385_v14  ;;  %v381_v21 = vmul.f32 -1.442695, %v609_v18  ;;  %v613_v22 = vadd.f32 %v266_v51, %v252_v19 }
 0x10d   :  { %439 = vpow2.f32 %v380_v17 }
 0x10e   :  { %441 = vpow2.f32 %v386_v20  ;;  %v382_v23 = vmul.f32 -1.442695, %v613_v22 }
 0x10f   :  { %443 = vpow2.f32 %v381_v21 }
 0x110   :  { %445 = vpow2.f32 %v382_v23 }
 0x113   :  { %v428_v24 = vpop.eup %427 }
 0x114   :  { %v430_v25 = vpop.eup %429  ;;  %v309_v26 = vadd.f32 1.0, %v428_v24 }
 0x115   :  { %v432_v27 = vpop.eup %431  ;;  %v315_v28 = vadd.f32 1.0, %v430_v25 }
 0x116   :  { %v434_v29 = vpop.eup %433  ;;  %447 = vrcp.f32 %v309_v26  ;;  %v310_v30 = vadd.f32 1.0, %v432_v27 }
 0x117   :  { %449 = vrcp.f32 %v315_v28  ;;  %v316_v31 = vadd.f32 1.0, %v434_v29 }
 0x118   :  { %v436_v32 = vpop.eup %435  ;;  %451 = vrcp.f32 %v310_v30 }
 0x119   :  { %v438_v33 = vpop.eup %437  ;;  %453 = vrcp.f32 %v316_v31  ;;  %v311_v34 = vadd.f32 1.0, %v436_v32 }
 0x11a   :  { %v440_v35 = vpop.eup %439  ;;  %v317_v36 = vadd.f32 1.0, %v438_v33 }
 0x11b   :  { %v442_v37 = vpop.eup %441  ;;  %455 = vrcp.f32 %v311_v34  ;;  %v312_v38 = vadd.f32 1.0, %v440_v35 }
 0x11c   :  { %v444_v39 = vpop.eup %443  ;;  %457 = vrcp.f32 %v317_v36  ;;  %v318_v40 = vadd.f32 1.0, %v442_v37 }
 0x11d   :  { %v446_v41 = vpop.eup %445  ;;  %459 = vrcp.f32 %v312_v38  ;;  %v313_v42 = vadd.f32 1.0, %v444_v39 }
 0x11e   :  { %461 = vrcp.f32 %v318_v40  ;;  %v314_v43 = vadd.f32 1.0, %v446_v41 }
 0x11f   :  { %463 = vrcp.f32 %v313_v42 }
 0x120   :  { %465 = vrcp.f32 %v314_v43 }
 0x123   :  { %v448_v44 = vpop.eup %447 }
 0x124   :  { %v450_v45 = vpop.eup %449  ;;  %v339_v46 = vmul.f32 %v448_v44, %v586_v54 }
 0x125   :  { %v452_v47 = vpop.eup %451  ;;  %v345_v48 = vmul.f32 %v450_v45, %v588_v55 }
 0x126   :  { %v454_v49 = vpop.eup %453  ;;  %349 = vst [vmem:[#allocation8] sm:$0xff] %v339_v46  ;;  %v340_v50 = vmul.f32 %v452_v47, %v592_v62 }
 0x127   :  { %355 = vst [vmem:[#allocation8 + $0x30] sm:$0xff] %v345_v48  ;;  %v346_v51 = vmul.f32 %v454_v49, %v594_v63 }
 0x128   :  { %v456_v52 = vpop.eup %455  ;;  %350 = vst [vmem:[#allocation8 + $0x8] sm:$0xff] %v340_v50 }
 0x129   :  { %v458_v53 = vpop.eup %457  ;;  %356 = vst [vmem:[#allocation8 + $0x38] sm:$0xff] %v346_v51  ;;  %v341_v56 = vmul.f32 %v456_v52, %v598_v7 }
 0x12a   :  { %v460_v57 = vpop.eup %459  ;;  %v347_v58 = vmul.f32 %v458_v53, %v600_v8 }
 0x12b   :  { %v462_v54 = vpop.eup %461  ;;  %351 = vst [vmem:[#allocation8 + $0x10] sm:$0xff] %v341_v56  ;;  %v342_v55 = vmul.f32 %v460_v57, %v602_v11 }
 0x12c   :  { %v464_v59 = vpop.eup %463  ;;  %357 = vst [vmem:[#allocation8 + $0x40] sm:$0xff] %v347_v58  ;;  %v348_v60 = vmul.f32 %v462_v54, %v606_v15 }
 0x12d   :  { %v466_v61 = vpop.eup %465  ;;  %352 = vst [vmem:[#allocation8 + $0x18] sm:$0xff] %v342_v55  ;;  %v343_v62 = vmul.f32 %v464_v59, %v609_v18 }
 0x12e   :  { %358 = vst [vmem:[#allocation8 + $0x48] sm:$0xff] %v348_v60  ;;  %v344_v63 = vmul.f32 %v466_v61, %v613_v22 }
 0x12f   :  { %353 = vst [vmem:[#allocation8 + $0x20] sm:$0xff] %v343_v62 }
 0x130   :  { %354 = vst [vmem:[#allocation8 + $0x28] sm:$0xff] %v344_v63 }
 0x131   :  { %518 = shalt.err (!%p515_p0)
}
 0x132   :  { %370 = dma.vmem_to_hbm [thread:$0]  %s365_s3, 1280, %s636_s4, [#allocation5], %s537_s25, %s537_s25, %s538_s26  }
 0x133   :  { %531 = dma.done.wait [#allocation5], 1280  }
 0x134   :  { %532 = vsyncadd [#allocation5], 4294966016 }
 0x135   :  { %374 = vsyncpa [#allocation4], 1 }
 0x136   :  { %375 = vsyncpa [#allocation7], 1 }
 0x137   :  { %376 = vsyncpa [#allocation5], 1 }

</bundles_post_ra>
